<compile_context>
chip_gen: v7x
topology: tpu7x:2x2x1
jax: 0.10.0
libtpu: 0.0.40
codegen_flags: <defaults>
</compile_context>

<pallas_src>
import functools
import math

import jax
import jax.numpy as jnp
from jax.experimental import pallas as pl
from jax.experimental.pallas import tpu as pltpu


def _round_up(x, m):
    return ((x + m - 1) // m) * m


# ---------------------------------------------------------------------------
# Pallas kernel: fused multi-layer MLP on one (tile_m, d_in_pad) row tile.
# refs = (x_ref, w0, b0, w1, b1, ..., o_ref)
# ---------------------------------------------------------------------------
def _ff_kernel(n_layers, compute_dtype, *refs):
    x_ref = refs[0]
    o_ref = refs[-1]
    wb = refs[1:-1]

    h = x_ref[...]                                # native dtype -> MXU
    for i in range(n_layers):
        w = wb[2 * i][...]                        # (d_in_pad, d_out_pad)
        b = wb[2 * i + 1][...]                    # (1, d_out_pad)
        acc = jnp.dot(h, w, preferred_element_type=jnp.float32)
        acc = acc + b.astype(jnp.float32)
        if i < n_layers - 1:
            # Epilogue in f32 (v5e has no bf16 VPU/EUP); tanh goes to the EUP.
            acc = jnp.tanh(acc)
            h = acc.astype(compute_dtype)         # bf16 back to MXU; no-op f32
        else:
            h = acc
    # TODO(synk): dropout between layers is train-mode only in PyTorch;
    # eval-mode (identity) semantics are reproduced here.
    o_ref[...] = h.astype(o_ref.dtype)


class FeedForwardPallas:
    """JAX/Pallas equivalent of the PyTorch FeedForward module (eval mode)."""

    LANE = 128

    def __init__(self, dims, dropout=None, reshape=False, use_bias=True,
                 key=jax.random.PRNGKey(0), dtype=jnp.float32):
        self.dims = tuple(dims)
        self.reshape = reshape
        self.n_layers = len(dims) - 1
        self.dtype = dtype
        self._buffered_ok = None  # lazily probed: does pl.Buffered(1) work?

        # Lane-dense feature sizes: every d_i -> multiple of 128.
        self.dims_pad = tuple(_round_up(d, self.LANE) for d in self.dims)

        # Deterministic init mirroring nn.Linear's default uniform init,
        # then zero-pad each weight/bias to the lane-dense shapes.
        self.weights = []  # (d_in_pad, d_out_pad)
        self.biases = []   # (1, d_out_pad)
        for i in range(self.n_layers):
            key, kw, kb = jax.random.split(key, 3)
            d_in, d_out = self.dims[i], self.dims[i + 1]
            d_in_p, d_out_p = self.dims_pad[i], self.dims_pad[i + 1]
            bound = 1.0 / math.sqrt(d_in)
            w = jax.random.uniform(kw, (d_in, d_out), dtype=jnp.float32,
                                   minval=-bound, maxval=bound)
            if use_bias:
                b = jax.random.uniform(kb, (1, d_out), dtype=jnp.float32,
                                       minval=-bound, maxval=bound)
            else:
                b = jnp.zeros((1, d_out), dtype=jnp.float32)
            w = jnp.pad(w, ((0, d_in_p - d_in), (0, d_out_p - d_out)))
            b = jnp.pad(b, ((0, 0), (0, d_out_p - d_out)))
            self.weights.append(w.astype(dtype))
            self.biases.append(b.astype(dtype))

    # -- spec helpers -------------------------------------------------------
    def _wb_specs(self, use_buffered):
        specs = []
        for w, b in zip(self.weights, self.biases):
            if use_buffered:
                # Grid-invariant operands: single buffer (no double-buffering).
                specs.append(pl.BlockSpec(w.shape, lambda i: (0, 0),
                                          pipeline_mode=pl.Buffered(1)))
                specs.append(pl.BlockSpec(b.shape, lambda i: (0, 0),
                                          pipeline_mode=pl.Buffered(1)))
            else:
                specs.append(pl.BlockSpec(w.shape, lambda i: (0, 0)))
                specs.append(pl.BlockSpec(b.shape, lambda i: (0, 0)))
        return specs

    def _run(self, x2, tile_m, use_buffered):
        m = x2.shape[0]                       # already padded to tile_m
        d_in_p = self.dims_pad[0]
        d_out_p = self.dims_pad[-1]
        itemsize = jnp.dtype(self.dtype).itemsize

        grid = (m // tile_m,)
        in_specs = [pl.BlockSpec((tile_m, d_in_p), lambda i: (i, 0))]
        in_specs += self._wb_specs(use_buffered)
        out_spec = pl.BlockSpec((tile_m, d_out_p), lambda i: (i, 0))

        # Advisory cost estimate (padded problem size).
        flops = 2 * m * sum(self.dims_pad[i] * self.dims_pad[i + 1]
                            for i in range(self.n_layers))
        transcendentals = m * sum(self.dims_pad[1:-1])
        wb_elems = sum(w.size + b.size
                       for w, b in zip(self.weights, self.biases))
        bytes_accessed = (m * d_in_p + m * d_out_p + wb_elems) * itemsize
        cost = pl.CostEstimate(flops=flops, transcendentals=transcendentals,
                               bytes_accessed=bytes_accessed)

        # Explicit VMEM budget (v7x: 64 MiB physical, 32 MiB default scoped).
        wb_bytes = wb_elems * itemsize * (1 if use_buffered else 2)
        act_bytes = 2 * tile_m * (d_in_p + d_out_p) * itemsize
        interm_bytes = 2 * tile_m * max(self.dims_pad) * 4  # f32 intermediates
        vmem_bytes = wb_bytes + act_bytes + interm_bytes
        vmem_limit = int(min(max(2 * vmem_bytes, 16 * 1024 ** 2),
                             48 * 1024 ** 2))

        return pl.pallas_call(
            functools.partial(_ff_kernel, self.n_layers, self.dtype),
            out_shape=jax.ShapeDtypeStruct((m, d_out_p), self.dtype),
            grid=grid,
            in_specs=in_specs,
            out_specs=out_spec,
            compiler_params=pltpu.CompilerParams(
                dimension_semantics=("parallel",),
                vmem_limit_bytes=vmem_limit),
            cost_estimate=cost,
        )(x2, *[a for wb in zip(self.weights, self.biases) for a in wb])

    # -- forward ------------------------------------------------------------
    def __call__(self, x, tile_m=256):
        orig_shape = x.shape
        d_in = self.dims[0]
        d_out = self.dims[-1]
        assert orig_shape[-1] == d_in
        x = x.astype(self.dtype)

        x2 = x.reshape(-1, d_in)
        m = x2.shape[0]

        itemsize = jnp.dtype(self.dtype).itemsize
        row_align = max(8, 32 // itemsize)     # 8 f32, 16 bf16, 32 int8/fp8
        # Row tile: as large as practical, sublane-aligned, no bigger than M.
        tile_m = min(tile_m, _round_up(m, row_align))
        tile_m = _round_up(tile_m, row_align)

        # Cap tile_m so the all-weights-resident design fits the most
        # constrained chip (v7x).
        # TODO(synk): for very large hidden dims the biggest layer should get
        # its own N-tiled grid axis instead of only shrinking tile_m.
        wb_bytes = sum(w.size + b.size
                       for w, b in zip(self.weights, self.biases)) * itemsize
        while tile_m > row_align:
            act = 2 * tile_m * (self.dims_pad[0] + self.dims_pad[-1]) * itemsize
            interm = 2 * tile_m * max(self.dims_pad) * 4
            if wb_bytes + act + interm <= 28 * 1024 ** 2:
                break
            tile_m = _round_up(tile_m // 2, row_align)

        m_pad = _round_up(m, tile_m)
        d_in_p = self.dims_pad[0]

        # Pad rows to the tile and features to the lane-dense width.
        x2 = jnp.pad(x2, ((0, m_pad - m), (0, d_in_p - d_in)))

        if self._buffered_ok is None:
            try:
                out = jax.block_until_ready(
                    self._run(x2, tile_m, use_buffered=True))
                self._buffered_ok = True
            except Exception:
                # Pallas version without pipeline_mode / Buffered(1) support:
                # fall back to default (double-buffered) weight specs.
                self._buffered_ok = False
                out = self._run(x2, tile_m, use_buffered=False)
        else:
            out = self._run(x2, tile_m, use_buffered=self._buffered_ok)

        out = out[:m, :d_out]
        out = out.reshape(orig_shape[:-1] + (d_out,))
        if self.reshape:
            out = out.reshape(out.shape[0], -1, 1)
        return out


def _reference(ff, x):
    """Plain-JAX reference reproducing the PyTorch forward (eval mode)."""
    h = x.astype(jnp.float32)
    for i in range(ff.n_layers):
        d_in, d_out = ff.dims[i], ff.dims[i + 1]
        w = ff.weights[i][:d_in, :d_out].astype(jnp.float32)
        b = ff.biases[i][:, :d_out].astype(jnp.float32)
        h = h @ w + b
        if i < ff.n_layers - 1:
            h = jnp.tanh(h)
    if ff.reshape:
        h = h.reshape(h.shape[0], -1, 1)
    return h


if __name__ == "__main__":
    key = jax.random.PRNGKey(0)
    kx, kp = jax.random.split(key)

    # Small shapes consistent with the module: batch=2, seq=8, dims=[32, 64, 16]
    dims = [32, 64, 16]
    B, S = 2, 8
    x = jax.random.normal(kx, (B, S, dims[0]), dtype=jnp.float32)

    ff = FeedForwardPallas(dims, dropout=None, reshape=False, use_bias=True,
                           key=kp)
    y = jax.block_until_ready(ff(x))
    y_ref = _reference(ff, x)
    assert y.shape == (B, S, dims[-1])
    assert jnp.allclose(y, y_ref, atol=1e-5, rtol=1e-5)

    # reshape=True path (matches the .view(batch, -1, 1) in PyTorch).
    ff2 = FeedForwardPallas(dims, dropout=None, reshape=True, use_bias=True,
                            key=kp)
    x2 = jax.random.normal(kx, (B * S, dims[0]), dtype=jnp.float32)
    y2 = jax.block_until_ready(ff2(x2))
    y2_ref = _reference(ff2, x2)
    assert y2.shape == (B * S, dims[-1], 1)
    assert jnp.allclose(y2, y2_ref, atol=1e-5, rtol=1e-5)

    print("KERNEL_OK")
</pallas_src>

<mosaic_0001>
module attributes {stable_mosaic.version = 11 : i64} {
  func.func @_ff_kernel(%arg0: i32, %arg1: memref<16x128xf32, #tpu.memory_space<vmem>>, %arg2: memref<128x128xf32, #tpu.memory_space<vmem>>, %arg3: memref<1x128xf32, #tpu.memory_space<vmem>>, %arg4: memref<128x128xf32, #tpu.memory_space<vmem>>, %arg5: memref<1x128xf32, #tpu.memory_space<vmem>>, %arg6: memref<16x128xf32, #tpu.memory_space<vmem>>) attributes {dimension_semantics = [#tpu.dimension_semantics<parallel>], iteration_bounds = array<i64: 1>, scalar_prefetch = 0 : i64, scratch_operands = 0 : i64, tpu.core_type = #tpu.core_type<tc>, window_params = [{transform_indices = @transform_0, window_bounds = array<i64: 16, 128>}, {pipeline_mode = #tpu.pipeline_mode<synchronous>, transform_indices = @transform_1, window_bounds = array<i64: 128, 128>}, {pipeline_mode = #tpu.pipeline_mode<synchronous>, transform_indices = @transform_2, window_bounds = array<i64: 1, 128>}, {pipeline_mode = #tpu.pipeline_mode<synchronous>, transform_indices = @transform_3, window_bounds = array<i64: 128, 128>}, {pipeline_mode = #tpu.pipeline_mode<synchronous>, transform_indices = @transform_4, window_bounds = array<i64: 1, 128>}, {transform_indices = @transform_5, window_bounds = array<i64: 16, 128>}]} {
    %c0 = arith.constant 0 : index
    %c0_0 = arith.constant 0 : index
    %0 = vector.load %arg1[%c0, %c0_0] : memref<16x128xf32, #tpu.memory_space<vmem>>, vector<16x128xf32>
    %c0_1 = arith.constant 0 : index
    %c0_2 = arith.constant 0 : index
    %1 = vector.load %arg2[%c0_1, %c0_2] : memref<128x128xf32, #tpu.memory_space<vmem>>, vector<128x128xf32>
    %c0_3 = arith.constant 0 : index
    %c0_4 = arith.constant 0 : index
    %2 = vector.load %arg3[%c0_3, %c0_4] : memref<1x128xf32, #tpu.memory_space<vmem>>, vector<1x128xf32>
    %cst = arith.constant dense<0.000000e+00> : vector<16x128xf32>
    %3 = tpu.matmul %0, %1, %cst {dimension_numbers = #tpu.dot_dimension_numbers<[1], [0], [0], [1], [0, 0, 1, 1], [], []>} : vector<16x128xf32>, vector<128x128xf32>, vector<16x128xf32> -> vector<16x128xf32>
    %4 = vector.broadcast %2 : vector<1x128xf32> to vector<16x128xf32>
    %5 = arith.addf %3, %4 : vector<16x128xf32>
    %6 = math.tanh %5 : vector<16x128xf32>
    %c0_5 = arith.constant 0 : index
    %c0_6 = arith.constant 0 : index
    %7 = vector.load %arg4[%c0_5, %c0_6] : memref<128x128xf32, #tpu.memory_space<vmem>>, vector<128x128xf32>
    %c0_7 = arith.constant 0 : index
    %c0_8 = arith.constant 0 : index
    %8 = vector.load %arg5[%c0_7, %c0_8] : memref<1x128xf32, #tpu.memory_space<vmem>>, vector<1x128xf32>
    %cst_9 = arith.constant dense<0.000000e+00> : vector<16x128xf32>
    %9 = tpu.matmul %6, %7, %cst_9 {dimension_numbers = #tpu.dot_dimension_numbers<[1], [0], [0], [1], [0, 0, 1, 1], [], []>} : vector<16x128xf32>, vector<128x128xf32>, vector<16x128xf32> -> vector<16x128xf32>
    %10 = vector.broadcast %8 : vector<1x128xf32> to vector<16x128xf32>
    %11 = arith.addf %9, %10 : vector<16x128xf32>
    %c0_10 = arith.constant 0 : index
    %c0_11 = arith.constant 0 : index
    %12 = vector.load %arg6[%c0_10, %c0_11] : memref<16x128xf32, #tpu.memory_space<vmem>>, vector<16x128xf32>
    tpu.vector_store %arg6[%c0_10, %c0_11], %11 {strides = array<i32>} : memref<16x128xf32, #tpu.memory_space<vmem>>, vector<16x128xf32>,
    return
  }
  func.func @transform_0(%arg0: i32) -> (i32, i32) {
    %c0_i32 = arith.constant 0 : i32
    %c0_i32_0 = arith.constant 0 : i32
    return %arg0, %c0_i32 : i32, i32
  }
  func.func @transform_1(%arg0: i32) -> (i32, i32) {
    %c0_i32 = arith.constant 0 : i32
    %c0_i32_0 = arith.constant 0 : i32
    %c0_i32_1 = arith.constant 0 : i32
    return %c0_i32, %c0_i32_0 : i32, i32
  }
  func.func @transform_2(%arg0: i32) -> (i32, i32) {
    %c0_i32 = arith.constant 0 : i32
    %c0_i32_0 = arith.constant 0 : i32
    %c0_i32_1 = arith.constant 0 : i32
    return %c0_i32, %c0_i32_0 : i32, i32
  }
  func.func @transform_3(%arg0: i32) -> (i32, i32) {
    %c0_i32 = arith.constant 0 : i32
    %c0_i32_0 = arith.constant 0 : i32
    %c0_i32_1 = arith.constant 0 : i32
    return %c0_i32, %c0_i32_0 : i32, i32
  }
  func.func @transform_4(%arg0: i32) -> (i32, i32) {
    %c0_i32 = arith.constant 0 : i32
    %c0_i32_0 = arith.constant 0 : i32
    %c0_i32_1 = arith.constant 0 : i32
    return %c0_i32, %c0_i32_0 : i32, i32
  }
  func.func @transform_5(%arg0: i32) -> (i32, i32) {
    %c0_i32 = arith.constant 0 : i32
    %c0_i32_0 = arith.constant 0 : i32
    return %arg0, %c0_i32 : i32, i32
  }
}

module attributes {stable_mosaic.version = 11 : i64} {
  func.func @_ff_kernel(%arg0: i32, %arg1: memref<16x128xf32, #tpu.memory_space<vmem>>, %arg2: memref<128x128xf32, #tpu.memory_space<vmem>>, %arg3: memref<1x128xf32, #tpu.memory_space<vmem>>, %arg4: memref<128x128xf32, #tpu.memory_space<vmem>>, %arg5: memref<1x128xf32, #tpu.memory_space<vmem>>, %arg6: memref<16x128xf32, #tpu.memory_space<vmem>>) attributes {dimension_semantics = [#tpu.dimension_semantics<parallel>], iteration_bounds = array<i64: 1>, scalar_prefetch = 0 : i64, scratch_operands = 0 : i64, tpu.core_type = #tpu.core_type<tc>, window_params = [{transform_indices = @transform_0, window_bounds = array<i64: 16, 128>}, {pipeline_mode = #tpu.pipeline_mode<synchronous>, transform_indices = @transform_1, window_bounds = array<i64: 128, 128>}, {pipeline_mode = #tpu.pipeline_mode<synchronous>, transform_indices = @transform_2, window_bounds = array<i64: 1, 128>}, {pipeline_mode = #tpu.pipeline_mode<synchronous>, transform_indices = @transform_3, window_bounds = array<i64: 128, 128>}, {pipeline_mode = #tpu.pipeline_mode<synchronous>, transform_indices = @transform_4, window_bounds = array<i64: 1, 128>}, {transform_indices = @transform_5, window_bounds = array<i64: 16, 128>}]} {
    %c0 = arith.constant 0 : index
    %c0_0 = arith.constant 0 : index
    %0 = vector.load %arg1[%c0, %c0_0] : memref<16x128xf32, #tpu.memory_space<vmem>>, vector<16x128xf32>
    %c0_1 = arith.constant 0 : index
    %c0_2 = arith.constant 0 : index
    %1 = vector.load %arg2[%c0_1, %c0_2] : memref<128x128xf32, #tpu.memory_space<vmem>>, vector<128x128xf32>
    %c0_3 = arith.constant 0 : index
    %c0_4 = arith.constant 0 : index
    %2 = vector.load %arg3[%c0_3, %c0_4] : memref<1x128xf32, #tpu.memory_space<vmem>>, vector<1x128xf32>
    %cst = arith.constant dense<0.000000e+00> : vector<16x128xf32>
    %3 = tpu.matmul %0, %1, %cst {dimension_numbers = #tpu.dot_dimension_numbers<[1], [0], [0], [1], [0, 0, 1, 1], [], []>} : vector<16x128xf32>, vector<128x128xf32>, vector<16x128xf32> -> vector<16x128xf32>
    %4 = vector.broadcast %2 : vector<1x128xf32> to vector<16x128xf32>
    %5 = arith.addf %3, %4 : vector<16x128xf32>
    %6 = math.tanh %5 : vector<16x128xf32>
    %c0_5 = arith.constant 0 : index
    %c0_6 = arith.constant 0 : index
    %7 = vector.load %arg4[%c0_5, %c0_6] : memref<128x128xf32, #tpu.memory_space<vmem>>, vector<128x128xf32>
    %c0_7 = arith.constant 0 : index
    %c0_8 = arith.constant 0 : index
    %8 = vector.load %arg5[%c0_7, %c0_8] : memref<1x128xf32, #tpu.memory_space<vmem>>, vector<1x128xf32>
    %cst_9 = arith.constant dense<0.000000e+00> : vector<16x128xf32>
    %9 = tpu.matmul %6, %7, %cst_9 {dimension_numbers = #tpu.dot_dimension_numbers<[1], [0], [0], [1], [0, 0, 1, 1], [], []>} : vector<16x128xf32>, vector<128x128xf32>, vector<16x128xf32> -> vector<16x128xf32>
    %10 = vector.broadcast %8 : vector<1x128xf32> to vector<16x128xf32>
    %11 = arith.addf %9, %10 : vector<16x128xf32>
    %c0_10 = arith.constant 0 : index
    %c0_11 = arith.constant 0 : index
    %12 = vector.load %arg6[%c0_10, %c0_11] : memref<16x128xf32, #tpu.memory_space<vmem>>, vector<16x128xf32>
    tpu.vector_store %arg6[%c0_10, %c0_11], %11 {strides = array<i32>} : memref<16x128xf32, #tpu.memory_space<vmem>>, vector<16x128xf32>,
    return
  }
  func.func @transform_0(%arg0: i32) -> (i32, i32) {
    %c0_i32 = arith.constant 0 : i32
    %c0_i32_0 = arith.constant 0 : i32
    return %arg0, %c0_i32 : i32, i32
  }
  func.func @transform_1(%arg0: i32) -> (i32, i32) {
    %c0_i32 = arith.constant 0 : i32
    %c0_i32_0 = arith.constant 0 : i32
    %c0_i32_1 = arith.constant 0 : i32
    return %c0_i32, %c0_i32_0 : i32, i32
  }
  func.func @transform_2(%arg0: i32) -> (i32, i32) {
    %c0_i32 = arith.constant 0 : i32
    %c0_i32_0 = arith.constant 0 : i32
    %c0_i32_1 = arith.constant 0 : i32
    return %c0_i32, %c0_i32_0 : i32, i32
  }
  func.func @transform_3(%arg0: i32) -> (i32, i32) {
    %c0_i32 = arith.constant 0 : i32
    %c0_i32_0 = arith.constant 0 : i32
    %c0_i32_1 = arith.constant 0 : i32
    return %c0_i32, %c0_i32_0 : i32, i32
  }
  func.func @transform_4(%arg0: i32) -> (i32, i32) {
    %c0_i32 = arith.constant 0 : i32
    %c0_i32_0 = arith.constant 0 : i32
    %c0_i32_1 = arith.constant 0 : i32
    return %c0_i32, %c0_i32_0 : i32, i32
  }
  func.func @transform_5(%arg0: i32) -> (i32, i32) {
    %c0_i32 = arith.constant 0 : i32
    %c0_i32_0 = arith.constant 0 : i32
    return %arg0, %c0_i32 : i32, i32
  }
}

</mosaic_0001>

<bundles_post_ra>
// kernel: tpu_custom_call.1
= control target key start
LH: loop header
LB: loop body
LE: loop exit
PB: predicated region body
PF: predicated region fallthrough
CT: control target
= control target key end

     0   :  { %10 = vsyncpa [#allocation3], 0  ;;  %s667_s0 = inlined_call_operand.hbm [shape: f32[16,128], index: 0, kind: input, shape index: {}]   ;;  %s668_s1 = inlined_call_operand.hbm [shape: f32[128,128], index: 1, kind: input, shape index: {}]   ;;  %s669_s2 = inlined_call_operand.vmem [shape: f32[1,128], index: 2, kind: input, shape index: {}]   ;;  %s670_s3 = inlined_call_operand.hbm [shape: f32[128,128], index: 3, kind: input, shape index: {}]   ;;  %s671_s4 = inlined_call_operand.vmem [shape: f32[1,128], index: 4, kind: input, shape index: {}]   ;;  %s672_s5 = inlined_call_operand.hbm [shape: f32[16,128], index: 5, kind: output, shape index: {}]  }
   0x1   :  { %11 = vsyncpa [#allocation6], 0 }
   0x2   :  { %12 = vsyncpa [#allocation4], 0  ;;  %s558_s18 = smov [#allocation5]   ;;  %s559_s20 = smov [#allocation2]  }
   0x3   :  { %s30_s19 = sshll.u32 %s558_s18, 4  ;;  %s18_s21 = sshll.u32 %s559_s20, 4  ;;  %s31_s19 = int_to_ptr.vmem [resolvable:$true] %s30_s19  ;;  %s594_s21 = int_to_ptr.vmem [resolvable:$true] %s18_s21 }
   0x4   :  { %s464_s24 = scalar_lea.hbm %s668_s1, 2048 }
   0x5   :  { %p465_p0 = scmp.ne.s32.totalorder %s668_s1, %s464_s24  ;;  %p468_p1 = scmp.lt.u32.totalorder %s464_s24, %s668_s1 }
   0x7   :  { %p470_p2 = pnand %p468_p1, %p465_p0 }
   0x9   :  { %473 = shalt.err (!%p470_p2)
}
   0xa   :  { %s474_s29 = scalar_lea.vmem %s31_s19, 2048  ;;  %p479_p4 = scmp.lt.s32.totalorder %s31_s19, %s31_s19 }
   0xb   :  { %p475_p3 = scmp.ne.s32.totalorder %s31_s19, %s474_s29  ;;  %p480_p5 = scmp.lt.s32.totalorder %s474_s29, %s474_s29 }
   0xd   :  { %p481_p6 = por %p480_p5, %p479_p4 }
   0xf   :  { %p482_p7 = pnand %p481_p6, %p475_p3 }
  0x11   :  { %485 = shalt.err (!%p482_p7)
}
  0x12   :  { %s560_s30 = smov 128   ;;  %s561_s6 = smov 8  }
  0x13   :  { %36 = dma.hbm_to_vmem [thread:$0]  %s668_s1, 2048, %s31_s19, [#allocation6], %s560_s30, %s560_s30, %s561_s6  }
  0x14   :  { %s486_s11 = scalar_lea.hbm %s667_s0, 256 }
  0x15   :  { %p487_p8 = scmp.ne.s32.totalorder %s667_s0, %s486_s11  ;;  %p490_p9 = scmp.lt.u32.totalorder %s486_s11, %s667_s0 }
  0x17   :  { %p492_p10 = pnand %p490_p9, %p487_p8 }
  0x19   :  { %495 = shalt.err (!%p492_p10)
}
  0x1a   :  { %s496_s16 = scalar_lea.vmem %s594_s21, 256  ;;  %p501_p12 = scmp.lt.s32.totalorder %s594_s21, %s594_s21 }
  0x1b   :  { %p497_p11 = scmp.ne.s32.totalorder %s594_s21, %s496_s16  ;;  %p502_p13 = scmp.lt.s32.totalorder %s496_s16, %s496_s16 }
  0x1d   :  { %p503_p0 = por %p502_p13, %p501_p12 }
  0x1f   :  { %p504_p1 = pnand %p503_p0, %p497_p11 }
  0x21   :  { %507 = shalt.err (!%p504_p1)
}
  0x22   :  { %24 = dma.hbm_to_vmem [thread:$0]  %s667_s0, 256, %s594_s21, [#allocation3], %s560_s30, %s560_s30, %s561_s6  }
  0x23   :  { %s562_s18 = smov [#allocation7]   ;;  %s508_s23 = scalar_lea.hbm %s670_s3, 2048 }
  0x24   :  { %s44_s19 = sshll.u32 %s562_s18, 4  ;;  %p509_p2 = scmp.ne.s32.totalorder %s670_s3, %s508_s23  ;;  %s45_s19 = int_to_ptr.vmem [resolvable:$true] %s44_s19 }
  0x25   :  { %p512_p3 = scmp.lt.u32.totalorder %s508_s23, %s670_s3 }
  0x27   :  { %p514_p4 = pnand %p512_p3, %p509_p2 }
  0x29   :  { %517 = shalt.err (!%p514_p4)
}
  0x2a   :  { %s518_s28 = scalar_lea.vmem %s45_s19, 2048  ;;  %p523_p6 = scmp.lt.s32.totalorder %s45_s19, %s45_s19 }
  0x2b   :  { %p519_p5 = scmp.ne.s32.totalorder %s45_s19, %s518_s28  ;;  %p524_p7 = scmp.lt.s32.totalorder %s518_s28, %s518_s28 }
  0x2d   :  { %p525_p8 = por %p524_p7, %p523_p6 }
  0x2f   :  { %p526_p9 = pnand %p525_p8, %p519_p5 }
  0x31   :  { %529 = shalt.err (!%p526_p9)
}
  0x32   :  { %50 = dma.hbm_to_vmem [thread:$0]  %s670_s3, 2048, %s45_s19, [#allocation6], %s560_s30, %s560_s30, %s561_s6  }
  0x33   :  { %552 = dma.done.wait [#allocation3], 256  }
  0x34   :  { %553 = vsyncadd [#allocation3], 4294967040 }
  0x35   :  { %554 = dma.done.wait [#allocation6], 4096  }
  0x36   :  { %555 = vsyncadd [#allocation6], 4294963200  ;;  %v64_v0 = vld [vmem:[#allocation5] sm:$0xff]  ;;  %v65_v1 = vld [vmem:[#allocation5 + $0x8] sm:$0xff]  ;;  %s563_s9 = smov [#allocation8]  }
  0x37   :  { %v66_v2 = vld [vmem:[#allocation5 + $0x10] sm:$0xff]  ;;  %v390_v3 = vpack.c.bf16 %v65_v1, %v64_v0  ;;  %v67_v4 = vld [vmem:[#allocation5 + $0x18] sm:$0xff]  ;;  %v68_v6 = vld [vmem:[#allocation5 + $0x20] sm:$0xff]  ;;  %s269_s10 = sshll.u32 %s563_s9, 4  ;;  %s270_s10 = int_to_ptr.vmem [resolvable:$true] %s269_s10 }
  0x38   :  { %v394_v5 = vpack.c.bf16 %v67_v4, %v66_v2  ;;  %v69_v7 = vld [vmem:[#allocation5 + $0x28] sm:$0xff]  ;;  %v70_v9 = vld [vmem:[#allocation5 + $0x30] sm:$0xff]  ;;  %v71_v10 = vld [vmem:[#allocation5 + $0x38] sm:$0xff]  ;;  %p535_p11 = scmp.lt.s32.totalorder %s270_s10, %s270_s10 }
  0x39   :  { %391 = vmatprep.subr.bf16.mxu0 %v390_v3  ;;  %v398_v8 = vpack.c.bf16 %v69_v7, %v68_v6  ;;  %v62_v11 = vld [vmem:[#allocation2] sm:$0xff]  ;;  %v164_v12 = vld [vmem:[#allocation7] sm:$0xff]  ;;  %v165_v13 = vld [vmem:[#allocation7 + $0x8] sm:$0xff]  ;;  %v402_v20 = vpack.c.bf16 %v71_v10, %v70_v9 }
  0x3a   :  { %393 = vmatpush3.bf16.msra.mxu0 %v390_v3  ;;  %352 = vmatprep.mubr.f32.mxu0 %v62_v11  ;;  %v166_v14 = vld [vmem:[#allocation7 + $0x10] sm:$0xff]  ;;  %v422_v15 = vpack.c.bf16 %v165_v13, %v164_v12  ;;  %v167_v16 = vld [vmem:[#allocation7 + $0x18] sm:$0xff]  ;;  %v168_v18 = vld [vmem:[#allocation7 + $0x20] sm:$0xff] }
  0x3b   :  { %395 = vmatprep.subr.bf16.mxu0 %v394_v5  ;;  %v426_v17 = vpack.c.bf16 %v167_v16, %v166_v14  ;;  %v169_v19 = vld [vmem:[#allocation7 + $0x28] sm:$0xff]  ;;  %v72_v21 = vld [vmem:[#allocation5 + $0x40] sm:$0xff]  ;;  %v170_v24 = vld [vmem:[#allocation7 + $0x30] sm:$0xff] }
  0x3c   :  { %423 = vmatprep.subr.bf16.mxu1 %v422_v15  ;;  %v73_v22 = vld [vmem:[#allocation5 + $0x48] sm:$0xff]  ;;  %v430_v23 = vpack.c.bf16 %v169_v19, %v168_v18  ;;  %v171_v25 = vld [vmem:[#allocation7 + $0x38] sm:$0xff]  ;;  %v74_v27 = vld [vmem:[#allocation5 + $0x50] sm:$0xff] }
  0x3d   :  { %425 = vmatpush3.bf16.msra.mxu1 %v422_v15  ;;  %v406_v26 = vpack.c.bf16 %v73_v22, %v72_v21  ;;  %v75_v28 = vld [vmem:[#allocation5 + $0x58] sm:$0xff]  ;;  %v434_v29 = vpack.c.bf16 %v171_v25, %v170_v24  ;;  %v76_v31 = vld [vmem:[#allocation5 + $0x60] sm:$0xff]  ;;  %v77_v32 = vld [vmem:[#allocation5 + $0x68] sm:$0xff] }
  0x3e   :  { %397 = vmatpush3.bf16.msra.mxu0 %v394_v5  ;;  %427 = vmatprep.subr.bf16.mxu1 %v426_v17  ;;  %v410_v30 = vpack.c.bf16 %v75_v28, %v74_v27  ;;  %v414_v33 = vpack.c.bf16 %v77_v32, %v76_v31  ;;  %v78_v34 = vld [vmem:[#allocation5 + $0x70] sm:$0xff]  ;;  %v79_v35 = vld [vmem:[#allocation5 + $0x78] sm:$0xff]  ;;  %v172_v38 = vld [vmem:[#allocation7 + $0x40] sm:$0xff] }
  0x3f   :  { %399 = vmatprep.subr.bf16.mxu0 %v398_v8  ;;  %v418_v36 = vpack.c.bf16 %v79_v35, %v78_v34  ;;  %v63_v37 = vld [vmem:[#allocation2 + $0x8] sm:$0xff]  ;;  %v173_v39 = vld [vmem:[#allocation7 + $0x48] sm:$0xff]  ;;  %v174_v41 = vld [vmem:[#allocation7 + $0x50] sm:$0xff] }
  0x40   :  { %v438_v40 = vpack.c.bf16 %v173_v39, %v172_v38  ;;  %v175_v42 = vld [vmem:[#allocation7 + $0x58] sm:$0xff]  ;;  %v176_v44 = vld [vmem:[#allocation7 + $0x60] sm:$0xff]  ;;  %v177_v45 = vld [vmem:[#allocation7 + $0x68] sm:$0xff] }
  0x41   :  { %429 = vmatpush3.bf16.msra.mxu1 %v426_v17  ;;  %v442_v43 = vpack.c.bf16 %v175_v42, %v174_v41  ;;  %v178_v46 = vld [vmem:[#allocation7 + $0x70] sm:$0xff]  ;;  %v446_v47 = vpack.c.bf16 %v177_v45, %v176_v44  ;;  %v179_v48 = vld [vmem:[#allocation7 + $0x78] sm:$0xff] }
  0x42   :  { %401 = vmatpush3.bf16.msra.mxu0 %v398_v8  ;;  %431 = vmatprep.subr.bf16.mxu1 %v430_v23  ;;  %v450_v49 = vpack.c.bf16 %v179_v48, %v178_v46  ;;  %v282_v50 = vld [vmem:[%s669_s2] ss:$0 sm:$0xff]  ;;  %s530_s2 = scalar_lea.vmem %s270_s10, 256 }
  0x43   :  { %403 = vmatprep.subr.bf16.mxu0 %v402_v20  ;;  %v283_v57 = vld [vmem:[%s671_s4] ss:$0 sm:$0xff]  ;;  %p531_p10 = scmp.ne.s32.totalorder %s270_s10, %s530_s2  ;;  %p536_p12 = scmp.lt.s32.totalorder %s530_s2, %s530_s2 }
  0x45   :  { %433 = vmatpush3.bf16.msra.mxu1 %v430_v23  ;;  %p537_p13 = por %p536_p12, %p535_p11 }
  0x46   :  { %405 = vmatpush3.bf16.msra.mxu0 %v402_v20  ;;  %435 = vmatprep.subr.bf16.mxu1 %v434_v29 }
  0x47   :  { %407 = vmatprep.subr.bf16.mxu0 %v406_v26  ;;  %p538_p0 = pnand %p537_p13, %p531_p10 }
  0x49   :  { %437 = vmatpush3.bf16.msra.mxu1 %v434_v29 }
  0x4a   :  { %409 = vmatpush3.bf16.msra.mxu0 %v406_v26  ;;  %439 = vmatprep.subr.bf16.mxu1 %v438_v40 }
  0x4b   :  { %411 = vmatprep.subr.bf16.mxu0 %v410_v30 }
  0x4d   :  { %441 = vmatpush3.bf16.msra.mxu1 %v438_v40 }
  0x4e   :  { %413 = vmatpush3.bf16.msra.mxu0 %v410_v30  ;;  %443 = vmatprep.subr.bf16.mxu1 %v442_v43 }
  0x4f   :  { %415 = vmatprep.subr.bf16.mxu0 %v414_v33 }
  0x51   :  { %445 = vmatpush3.bf16.msra.mxu1 %v442_v43 }
  0x52   :  { %417 = vmatpush3.bf16.msra.mxu0 %v414_v33  ;;  %447 = vmatprep.subr.bf16.mxu1 %v446_v47 }
  0x53   :  { %419 = vmatprep.subr.bf16.mxu0 %v418_v36 }
  0x55   :  { %449 = vmatpush3.bf16.msra.mxu1 %v446_v47 }
  0x56   :  { %421 = vmatpush3.bf16.msra.mxu0 %v418_v36  ;;  %451 = vmatprep.subr.bf16.mxu1 %v450_v49 }
  0x59   :  { %353 = vmatmul.mubr.f32.vlgmr.msra.gmra.mrb[0].mxu0 %v63_v37  ;;  %453 = vmatpush3.bf16.msra.mxu1 %v450_v49 }
 0x12c   :  { %v354_v51 = vpop.f32.mrb[0].mxu0 }
 0x12d   :  { %v159_v52 = vadd.f32 %v354_v51, %v282_v50  ;;  %v153_v53 = vpop.f32.mrb[1].mxu0 }
 0x12e   :  { %v154_v54 = vadd.f32 %v282_v50, %v153_v53 }
 0x130   :  { %460 = vtanh.f32 %v154_v54 }
 0x131   :  { %462 = vtanh.f32 %v159_v52 }
 0x13a   :  { %v461_v55 = vpop.eup %460 }
 0x13b   :  { %v463_v56 = vpop.eup %462  ;;  %387 = vmatprep.mubr.f32.mxu1 %v461_v55 }
 0x13c   :  { %388 = vmatmul.mubr.f32.vlgmr.msra.gmra.mrb[0].mxu1 %v463_v56 }
 0x20f   :  { %v389_v58 = vpop.f32.mrb[0].mxu1 }
 0x210   :  { %v259_v59 = vadd.f32 %v389_v58, %v283_v57  ;;  %v253_v60 = vpop.f32.mrb[1].mxu1 }
 0x211   :  { %v254_v61 = vadd.f32 %v283_v57, %v253_v60 }
 0x212   :  { %263 = vst [vmem:[#allocation8 + $0x8] sm:$0xff] %v259_v59 }
 0x213   :  { %262 = vst [vmem:[#allocation8] sm:$0xff] %v254_v61 }
 0x214   :  { %541 = shalt.err (!%p538_p0)
}
 0x215   :  { %s542_s4 = scalar_lea.hbm %s672_s5, 256 }
 0x216   :  { %p543_p1 = scmp.ne.s32.totalorder %s672_s5, %s542_s4  ;;  %p546_p2 = scmp.lt.u32.totalorder %s542_s4, %s672_s5 }
 0x218   :  { %p548_p3 = pnand %p546_p2, %p543_p1 }
 0x21a   :  { %551 = shalt.err (!%p548_p3)
}
 0x21b   :  { %275 = dma.vmem_to_hbm [thread:$0]  %s270_s10, 256, %s672_s5, [#allocation4], %s560_s30, %s560_s30, %s561_s6  }
 0x21c   :  { %556 = dma.done.wait [#allocation4], 256  }
 0x21d   :  { %557 = vsyncadd [#allocation4], 4294967040 }
 0x21e   :  { %279 = vsyncpa [#allocation3], 1 }
 0x21f   :  { %280 = vsyncpa [#allocation6], 1 }
 0x220   :  { %281 = vsyncpa [#allocation4], 1 }

// kernel: tpu_custom_call.1
= control target key start
LH: loop header
LB: loop body
LE: loop exit
PB: predicated region body
PF: predicated region fallthrough
CT: control target
= control target key end

     0   :  { %10 = vsyncpa [#allocation3], 0  ;;  %s667_s0 = inlined_call_operand.hbm [shape: f32[16,128], index: 0, kind: input, shape index: {}]   ;;  %s668_s1 = inlined_call_operand.hbm [shape: f32[128,128], index: 1, kind: input, shape index: {}]   ;;  %s669_s2 = inlined_call_operand.vmem [shape: f32[1,128], index: 2, kind: input, shape index: {}]   ;;  %s670_s3 = inlined_call_operand.hbm [shape: f32[128,128], index: 3, kind: input, shape index: {}]   ;;  %s671_s4 = inlined_call_operand.vmem [shape: f32[1,128], index: 4, kind: input, shape index: {}]   ;;  %s672_s5 = inlined_call_operand.hbm [shape: f32[16,128], index: 5, kind: output, shape index: {}]  }
   0x1   :  { %11 = vsyncpa [#allocation6], 0 }
   0x2   :  { %12 = vsyncpa [#allocation4], 0  ;;  %s558_s18 = smov [#allocation5]   ;;  %s559_s20 = smov [#allocation2]  }
   0x3   :  { %s30_s19 = sshll.u32 %s558_s18, 4  ;;  %s18_s21 = sshll.u32 %s559_s20, 4  ;;  %s31_s19 = int_to_ptr.vmem [resolvable:$true] %s30_s19  ;;  %s594_s21 = int_to_ptr.vmem [resolvable:$true] %s18_s21 }
   0x4   :  { %s464_s24 = scalar_lea.hbm %s668_s1, 2048 }
   0x5   :  { %p465_p0 = scmp.ne.s32.totalorder %s668_s1, %s464_s24  ;;  %p468_p1 = scmp.lt.u32.totalorder %s464_s24, %s668_s1 }
   0x7   :  { %p470_p2 = pnand %p468_p1, %p465_p0 }
   0x9   :  { %473 = shalt.err (!%p470_p2)
}
   0xa   :  { %s474_s29 = scalar_lea.vmem %s31_s19, 2048  ;;  %p479_p4 = scmp.lt.s32.totalorder %s31_s19, %s31_s19 }
   0xb   :  { %p475_p3 = scmp.ne.s32.totalorder %s31_s19, %s474_s29  ;;  %p480_p5 = scmp.lt.s32.totalorder %s474_s29, %s474_s29 }
   0xd   :  { %p481_p6 = por %p480_p5, %p479_p4 }
   0xf   :  { %p482_p7 = pnand %p481_p6, %p475_p3 }
  0x11   :  { %485 = shalt.err (!%p482_p7)
}
  0x12   :  { %s560_s30 = smov 128   ;;  %s561_s6 = smov 8  }
  0x13   :  { %36 = dma.hbm_to_vmem [thread:$0]  %s668_s1, 2048, %s31_s19, [#allocation6], %s560_s30, %s560_s30, %s561_s6  }
  0x14   :  { %s486_s11 = scalar_lea.hbm %s667_s0, 256 }
  0x15   :  { %p487_p8 = scmp.ne.s32.totalorder %s667_s0, %s486_s11  ;;  %p490_p9 = scmp.lt.u32.totalorder %s486_s11, %s667_s0 }
  0x17   :  { %p492_p10 = pnand %p490_p9, %p487_p8 }
  0x19   :  { %495 = shalt.err (!%p492_p10)
}
  0x1a   :  { %s496_s16 = scalar_lea.vmem %s594_s21, 256  ;;  %p501_p12 = scmp.lt.s32.totalorder %s594_s21, %s594_s21 }
  0x1b   :  { %p497_p11 = scmp.ne.s32.totalorder %s594_s21, %s496_s16  ;;  %p502_p13 = scmp.lt.s32.totalorder %s496_s16, %s496_s16 }
  0x1d   :  { %p503_p0 = por %p502_p13, %p501_p12 }
  0x1f   :  { %p504_p1 = pnand %p503_p0, %p497_p11 }
  0x21   :  { %507 = shalt.err (!%p504_p1)
}
  0x22   :  { %24 = dma.hbm_to_vmem [thread:$0]  %s667_s0, 256, %s594_s21, [#allocation3], %s560_s30, %s560_s30, %s561_s6  }
  0x23   :  { %s562_s18 = smov [#allocation7]   ;;  %s508_s23 = scalar_lea.hbm %s670_s3, 2048 }
  0x24   :  { %s44_s19 = sshll.u32 %s562_s18, 4  ;;  %p509_p2 = scmp.ne.s32.totalorder %s670_s3, %s508_s23  ;;  %s45_s19 = int_to_ptr.vmem [resolvable:$true] %s44_s19 }
  0x25   :  { %p512_p3 = scmp.lt.u32.totalorder %s508_s23, %s670_s3 }
  0x27   :  { %p514_p4 = pnand %p512_p3, %p509_p2 }
  0x29   :  { %517 = shalt.err (!%p514_p4)
}
  0x2a   :  { %s518_s28 = scalar_lea.vmem %s45_s19, 2048  ;;  %p523_p6 = scmp.lt.s32.totalorder %s45_s19, %s45_s19 }
  0x2b   :  { %p519_p5 = scmp.ne.s32.totalorder %s45_s19, %s518_s28  ;;  %p524_p7 = scmp.lt.s32.totalorder %s518_s28, %s518_s28 }
  0x2d   :  { %p525_p8 = por %p524_p7, %p523_p6 }
  0x2f   :  { %p526_p9 = pnand %p525_p8, %p519_p5 }
  0x31   :  { %529 = shalt.err (!%p526_p9)
}
  0x32   :  { %50 = dma.hbm_to_vmem [thread:$0]  %s670_s3, 2048, %s45_s19, [#allocation6], %s560_s30, %s560_s30, %s561_s6  }
  0x33   :  { %552 = dma.done.wait [#allocation3], 256  }
  0x34   :  { %553 = vsyncadd [#allocation3], 4294967040 }
  0x35   :  { %554 = dma.done.wait [#allocation6], 4096  }
  0x36   :  { %555 = vsyncadd [#allocation6], 4294963200  ;;  %v64_v0 = vld [vmem:[#allocation5] sm:$0xff]  ;;  %v65_v1 = vld [vmem:[#allocation5 + $0x8] sm:$0xff]  ;;  %s563_s9 = smov [#allocation8]  }
  0x37   :  { %v66_v2 = vld [vmem:[#allocation5 + $0x10] sm:$0xff]  ;;  %v390_v3 = vpack.c.bf16 %v65_v1, %v64_v0  ;;  %v67_v4 = vld [vmem:[#allocation5 + $0x18] sm:$0xff]  ;;  %v68_v6 = vld [vmem:[#allocation5 + $0x20] sm:$0xff]  ;;  %s269_s10 = sshll.u32 %s563_s9, 4  ;;  %s270_s10 = int_to_ptr.vmem [resolvable:$true] %s269_s10 }
  0x38   :  { %v394_v5 = vpack.c.bf16 %v67_v4, %v66_v2  ;;  %v69_v7 = vld [vmem:[#allocation5 + $0x28] sm:$0xff]  ;;  %v70_v9 = vld [vmem:[#allocation5 + $0x30] sm:$0xff]  ;;  %v71_v10 = vld [vmem:[#allocation5 + $0x38] sm:$0xff]  ;;  %p535_p11 = scmp.lt.s32.totalorder %s270_s10, %s270_s10 }
  0x39   :  { %391 = vmatprep.subr.bf16.mxu0 %v390_v3  ;;  %v398_v8 = vpack.c.bf16 %v69_v7, %v68_v6  ;;  %v62_v11 = vld [vmem:[#allocation2] sm:$0xff]  ;;  %v164_v12 = vld [vmem:[#allocation7] sm:$0xff]  ;;  %v165_v13 = vld [vmem:[#allocation7 + $0x8] sm:$0xff]  ;;  %v402_v20 = vpack.c.bf16 %v71_v10, %v70_v9 }
  0x3a   :  { %393 = vmatpush3.bf16.msra.mxu0 %v390_v3  ;;  %352 = vmatprep.mubr.f32.mxu0 %v62_v11  ;;  %v166_v14 = vld [vmem:[#allocation7 + $0x10] sm:$0xff]  ;;  %v422_v15 = vpack.c.bf16 %v165_v13, %v164_v12  ;;  %v167_v16 = vld [vmem:[#allocation7 + $0x18] sm:$0xff]  ;;  %v168_v18 = vld [vmem:[#allocation7 + $0x20] sm:$0xff] }
  0x3b   :  { %395 = vmatprep.subr.bf16.mxu0 %v394_v5  ;;  %v426_v17 = vpack.c.bf16 %v167_v16, %v166_v14  ;;  %v169_v19 = vld [vmem:[#allocation7 + $0x28] sm:$0xff]  ;;  %v72_v21 = vld [vmem:[#allocation5 + $0x40] sm:$0xff]  ;;  %v170_v24 = vld [vmem:[#allocation7 + $0x30] sm:$0xff] }
  0x3c   :  { %423 = vmatprep.subr.bf16.mxu1 %v422_v15  ;;  %v73_v22 = vld [vmem:[#allocation5 + $0x48] sm:$0xff]  ;;  %v430_v23 = vpack.c.bf16 %v169_v19, %v168_v18  ;;  %v171_v25 = vld [vmem:[#allocation7 + $0x38] sm:$0xff]  ;;  %v74_v27 = vld [vmem:[#allocation5 + $0x50] sm:$0xff] }
  0x3d   :  { %425 = vmatpush3.bf16.msra.mxu1 %v422_v15  ;;  %v406_v26 = vpack.c.bf16 %v73_v22, %v72_v21  ;;  %v75_v28 = vld [vmem:[#allocation5 + $0x58] sm:$0xff]  ;;  %v434_v29 = vpack.c.bf16 %v171_v25, %v170_v24  ;;  %v76_v31 = vld [vmem:[#allocation5 + $0x60] sm:$0xff]  ;;  %v77_v32 = vld [vmem:[#allocation5 + $0x68] sm:$0xff] }
  0x3e   :  { %397 = vmatpush3.bf16.msra.mxu0 %v394_v5  ;;  %427 = vmatprep.subr.bf16.mxu1 %v426_v17  ;;  %v410_v30 = vpack.c.bf16 %v75_v28, %v74_v27  ;;  %v414_v33 = vpack.c.bf16 %v77_v32, %v76_v31  ;;  %v78_v34 = vld [vmem:[#allocation5 + $0x70] sm:$0xff]  ;;  %v79_v35 = vld [vmem:[#allocation5 + $0x78] sm:$0xff]  ;;  %v172_v38 = vld [vmem:[#allocation7 + $0x40] sm:$0xff] }
  0x3f   :  { %399 = vmatprep.subr.bf16.mxu0 %v398_v8  ;;  %v418_v36 = vpack.c.bf16 %v79_v35, %v78_v34  ;;  %v63_v37 = vld [vmem:[#allocation2 + $0x8] sm:$0xff]  ;;  %v173_v39 = vld [vmem:[#allocation7 + $0x48] sm:$0xff]  ;;  %v174_v41 = vld [vmem:[#allocation7 + $0x50] sm:$0xff] }
  0x40   :  { %v438_v40 = vpack.c.bf16 %v173_v39, %v172_v38  ;;  %v175_v42 = vld [vmem:[#allocation7 + $0x58] sm:$0xff]  ;;  %v176_v44 = vld [vmem:[#allocation7 + $0x60] sm:$0xff]  ;;  %v177_v45 = vld [vmem:[#allocation7 + $0x68] sm:$0xff] }
  0x41   :  { %429 = vmatpush3.bf16.msra.mxu1 %v426_v17  ;;  %v442_v43 = vpack.c.bf16 %v175_v42, %v174_v41  ;;  %v178_v46 = vld [vmem:[#allocation7 + $0x70] sm:$0xff]  ;;  %v446_v47 = vpack.c.bf16 %v177_v45, %v176_v44  ;;  %v179_v48 = vld [vmem:[#allocation7 + $0x78] sm:$0xff] }
  0x42   :  { %401 = vmatpush3.bf16.msra.mxu0 %v398_v8  ;;  %431 = vmatprep.subr.bf16.mxu1 %v430_v23  ;;  %v450_v49 = vpack.c.bf16 %v179_v48, %v178_v46  ;;  %v282_v50 = vld [vmem:[%s669_s2] ss:$0 sm:$0xff]  ;;  %s530_s2 = scalar_lea.vmem %s270_s10, 256 }
  0x43   :  { %403 = vmatprep.subr.bf16.mxu0 %v402_v20  ;;  %v283_v57 = vld [vmem:[%s671_s4] ss:$0 sm:$0xff]  ;;  %p531_p10 = scmp.ne.s32.totalorder %s270_s10, %s530_s2  ;;  %p536_p12 = scmp.lt.s32.totalorder %s530_s2, %s530_s2 }
  0x45   :  { %433 = vmatpush3.bf16.msra.mxu1 %v430_v23  ;;  %p537_p13 = por %p536_p12, %p535_p11 }
  0x46   :  { %405 = vmatpush3.bf16.msra.mxu0 %v402_v20  ;;  %435 = vmatprep.subr.bf16.mxu1 %v434_v29 }
  0x47   :  { %407 = vmatprep.subr.bf16.mxu0 %v406_v26  ;;  %p538_p0 = pnand %p537_p13, %p531_p10 }
  0x49   :  { %437 = vmatpush3.bf16.msra.mxu1 %v434_v29 }
  0x4a   :  { %409 = vmatpush3.bf16.msra.mxu0 %v406_v26  ;;  %439 = vmatprep.subr.bf16.mxu1 %v438_v40 }
  0x4b   :  { %411 = vmatprep.subr.bf16.mxu0 %v410_v30 }
  0x4d   :  { %441 = vmatpush3.bf16.msra.mxu1 %v438_v40 }
  0x4e   :  { %413 = vmatpush3.bf16.msra.mxu0 %v410_v30  ;;  %443 = vmatprep.subr.bf16.mxu1 %v442_v43 }
  0x4f   :  { %415 = vmatprep.subr.bf16.mxu0 %v414_v33 }
  0x51   :  { %445 = vmatpush3.bf16.msra.mxu1 %v442_v43 }
  0x52   :  { %417 = vmatpush3.bf16.msra.mxu0 %v414_v33  ;;  %447 = vmatprep.subr.bf16.mxu1 %v446_v47 }
  0x53   :  { %419 = vmatprep.subr.bf16.mxu0 %v418_v36 }
  0x55   :  { %449 = vmatpush3.bf16.msra.mxu1 %v446_v47 }
  0x56   :  { %421 = vmatpush3.bf16.msra.mxu0 %v418_v36  ;;  %451 = vmatprep.subr.bf16.mxu1 %v450_v49 }
  0x59   :  { %353 = vmatmul.mubr.f32.vlgmr.msra.gmra.mrb[0].mxu0 %v63_v37  ;;  %453 = vmatpush3.bf16.msra.mxu1 %v450_v49 }
 0x12c   :  { %v354_v51 = vpop.f32.mrb[0].mxu0 }
 0x12d   :  { %v159_v52 = vadd.f32 %v354_v51, %v282_v50  ;;  %v153_v53 = vpop.f32.mrb[1].mxu0 }
 0x12e   :  { %v154_v54 = vadd.f32 %v282_v50, %v153_v53 }
 0x130   :  { %460 = vtanh.f32 %v154_v54 }
 0x131   :  { %462 = vtanh.f32 %v159_v52 }
 0x13a   :  { %v461_v55 = vpop.eup %460 }
 0x13b   :  { %v463_v56 = vpop.eup %462  ;;  %387 = vmatprep.mubr.f32.mxu1 %v461_v55 }
 0x13c   :  { %388 = vmatmul.mubr.f32.vlgmr.msra.gmra.mrb[0].mxu1 %v463_v56 }
 0x20f   :  { %v389_v58 = vpop.f32.mrb[0].mxu1 }
 0x210   :  { %v259_v59 = vadd.f32 %v389_v58, %v283_v57  ;;  %v253_v60 = vpop.f32.mrb[1].mxu1 }
 0x211   :  { %v254_v61 = vadd.f32 %v283_v57, %v253_v60 }
 0x212   :  { %263 = vst [vmem:[#allocation8 + $0x8] sm:$0xff] %v259_v59 }
 0x213   :  { %262 = vst [vmem:[#allocation8] sm:$0xff] %v254_v61 }
 0x214   :  { %541 = shalt.err (!%p538_p0)
}
 0x215   :  { %s542_s4 = scalar_lea.hbm %s672_s5, 256 }
 0x216   :  { %p543_p1 = scmp.ne.s32.totalorder %s672_s5, %s542_s4  ;;  %p546_p2 = scmp.lt.u32.totalorder %s542_s4, %s672_s5 }
 0x218   :  { %p548_p3 = pnand %p546_p2, %p543_p1 }
 0x21a   :  { %551 = shalt.err (!%p548_p3)
}
 0x21b   :  { %275 = dma.vmem_to_hbm [thread:$0]  %s270_s10, 256, %s672_s5, [#allocation4], %s560_s30, %s560_s30, %s561_s6  }
 0x21c   :  { %556 = dma.done.wait [#allocation4], 256  }
 0x21d   :  { %557 = vsyncadd [#allocation4], 4294967040 }
 0x21e   :  { %279 = vsyncpa [#allocation3], 1 }
 0x21f   :  { %280 = vsyncpa [#allocation6], 1 }
 0x220   :  { %281 = vsyncpa [#allocation4], 1 }

</bundles_post_ra>
